<compile_context>
chip_gen: v5e
topology: v5e:2x2
jax: 0.10.0
libtpu: 0.0.40
codegen_flags: <defaults>
</compile_context>

<pallas_src>
import jax
import jax.numpy as jnp
from jax import lax
from jax.experimental import pallas as pl
from jax.experimental.pallas import tpu as pltpu


# ----------------------------------------------------------------------------- helpers

def _divisors_desc(n):
    return [d for d in range(n, 0, -1) if n % d == 0]


def _valid_row_tiles(H):
    # out-block second-to-last dim: must be a multiple of 8 or the full extent.
    return [d for d in _divisors_desc(H) if d % 8 == 0 or d == H]


def _valid_chan_tiles(O):
    # w/b blocks' second-to-last dim: must be a multiple of 8 or the full extent.
    return [d for d in _divisors_desc(O) if d % 8 == 0 or d == O]


def _vmem_need_bytes(th, tO, W, C, s, x_bytes, c_bytes, o_bytes):
    """Rough per-step VMEM need (inputs/outputs double-buffered, scratch single)."""
    sWs = W * s * s
    tb = th * W
    x_blk = tb * C * x_bytes
    o_blk = tO * th * sWs * o_bytes
    w_blk = tO * C * c_bytes
    b_blk = tO * 4
    e_blk = W * sWs * c_bytes
    y_scr = tO * th * sWs * 4                      # f32 accumulation scratch
    return 2 * (x_blk + o_blk + w_blk + b_blk + e_blk) + y_scr


def _pick_tiles(B, H, W, C, O, s, x_bytes, c_bytes, o_bytes, budget):
    """Largest legal (th, tO) that fits the VMEM budget; prefer no output-channel split."""
    ths = _valid_row_tiles(H)
    tOs = _valid_chan_tiles(O)
    th, tO = ths[-1], tOs[-1]                      # last-resort smallest tiles
    found = False
    for cand_tO in tOs:                            # prefer tO == O (x fetched once)
        for cand_th in ths:                        # then the biggest row tile
            if _vmem_need_bytes(cand_th, cand_tO, W, C, s,
                                x_bytes, c_bytes, o_bytes) <= budget:
                th, tO = cand_th, cand_tO
                found = True
                break
        if found:
            break
    # v7x has 2 TensorCores: make sure there are at least 2 grid steps.
    if B * (H // th) * (O // tO) < 2:
        smaller_th = [d for d in ths if d < th]
        smaller_tO = [d for d in tOs if d < tO]
        if smaller_th:
            th = smaller_th[0]
        elif smaller_tO:
            tO = smaller_tO[0]
    return th, tO


def _row_expansion_matrix(W, s, dtype):
    """E_row[w, v*W*s + wc] = 1 iff wc // s == w  (one image row -> its s x (W*s) block)."""
    k = jnp.arange(W * s * s)
    src = (k % (W * s)) // s
    return (src[None, :] == jnp.arange(W)[:, None]).astype(dtype)


def _make_kernel(th, W, s, compute_dtype):
    sWs = W * s * s

    def kernel(x_ref, w_ref, b_ref, e_ref, o_ref, y_scr):
        # x_ref: (1, th*W, C)  token tile (one batch element, th image rows)
        # w_ref: (tO, C)       BN-folded 1x1-conv weight, compute dtype
        # b_ref: (tO, 1)       BN-folded bias, f32
        # e_ref: (W, s*W*s)    per-row 0/1 nearest-upsample expansion matrix
        # o_ref: (1, tO, th, s*W*s)  output block; wrapper reshape -> NCHW (free)
        # y_scr: (tO, th, s*W*s) f32 VMEM scratch
        w = w_ref[...]
        b = b_ref[...]
        e = e_ref[...]

        @pl.loop(0, th)
        def _(h):
            start = pl.multiple_of(h * W, W)
            xh = x_ref[0, pl.ds(start, W), :].astype(compute_dtype)      # (W, C)
            # 1x1 conv (+ folded BN): zh[o, w] = sum_c w[o, c] * xh[w, c]
            zh = lax.dot_general(w, xh, (((1,), (1,)), ((), ())),
                                 preferred_element_type=jnp.float32)      # (tO, W)
            zh = jnp.maximum(zh + b, 0.0)                                 # bias + ReLU (f32)
            # Nearest-neighbour upsample of one row: contraction is only W.
            yh = jnp.dot(zh.astype(compute_dtype), e,
                         preferred_element_type=jnp.float32)              # (tO, s*W*s)
            y_scr[:, h, :] = yh

        # One wide, lane-aligned cast + store of the whole block.
        o_ref[0] = y_scr[...].astype(o_ref.dtype)

    return kernel


# ----------------------------------------------------------------------------- wrapper

def fcu_up_pallas(x, conv_w, conv_b, bn_gamma, bn_beta, bn_mean, bn_var,
                  H, W, up_stride, *, bn_eps=1e-6, compute_dtype=None,
                  vmem_budget_bytes=28 * 1024 * 1024):
    """x: (B, H*W, C_in); conv_w: (C_out, C_in). Returns (B, C_out, H*s, W*s)."""
    B, N, C = x.shape
    O = conv_w.shape[0]
    s = int(up_stride)
    assert N == H * W and conv_w.shape == (O, C)

    if compute_dtype is None:
        compute_dtype = x.dtype
    compute_dtype = jnp.dtype(compute_dtype)
    out_dtype = x.dtype

    # Fold inference-mode BatchNorm into the 1x1 conv (per-out-channel scale/shift).
    inv = bn_gamma.astype(jnp.float32) / jnp.sqrt(bn_var.astype(jnp.float32) + bn_eps)
    w_f = (conv_w.astype(jnp.float32) * inv[:, None]).astype(compute_dtype)     # (O, C)
    b_f = ((conv_b.astype(jnp.float32) - bn_mean.astype(jnp.float32)) * inv
           + bn_beta.astype(jnp.float32)).reshape(O, 1)                         # (O, 1) f32

    sWs = W * s * s
    e_row = _row_expansion_matrix(W, s, compute_dtype)                           # (W, sWs)

    x_bytes = jnp.dtype(x.dtype).itemsize
    c_bytes = compute_dtype.itemsize
    o_bytes = jnp.dtype(out_dtype).itemsize
    th, tO = _pick_tiles(B, H, W, C, O, s, x_bytes, c_bytes, o_bytes, vmem_budget_bytes)
    nr = H // th
    no = O // tO
    tb = th * W

    need = _vmem_need_bytes(th, tO, W, C, s, x_bytes, c_bytes, o_bytes)
    vmem_limit = int(min(max(int(need * 1.4) + (4 << 20), 16 << 20), 60 << 20))

    kernel = _make_kernel(th, W, s, compute_dtype)

    out = pl.pallas_call(
        kernel,
        out_shape=jax.ShapeDtypeStruct((B, O, H, sWs), out_dtype),
        grid_spec=pltpu.PrefetchScalarGridSpec(
            num_scalar_prefetch=0,
            grid=(B, no, nr),
            in_specs=[
                pl.BlockSpec((1, tb, C), lambda b, oi, r: (b, r, 0)),
                pl.BlockSpec((tO, C), lambda b, oi, r: (oi, 0)),
                pl.BlockSpec((tO, 1), lambda b, oi, r: (oi, 0)),
                pl.BlockSpec((W, sWs), lambda b, oi, r: (0, 0)),
            ],
            out_specs=pl.BlockSpec((1, tO, th, sWs), lambda b, oi, r: (b, oi, r, 0)),
            scratch_shapes=[pltpu.VMEM((tO, th, sWs), jnp.float32)],
        ),
        compiler_params=pltpu.CompilerParams(
            dimension_semantics=("parallel", "parallel", "parallel"),
            vmem_limit_bytes=vmem_limit,
        ),
    )(x, w_f, b_f, e_row)

    # (B, O, H, s*W*s) -> (B, O, H*s, W*s): identical flat layout, pure reshape.
    return out.reshape(B, O, H * s, W * s)


# ----------------------------------------------------------------------------- reference

def fcu_up_ref(x, conv_w, conv_b, bn_gamma, bn_beta, bn_mean, bn_var,
               H, W, up_stride, bn_eps=1e-6):
    """Pure-JAX reference of the PyTorch forward (eval-mode BatchNorm)."""
    B, N, C = x.shape
    x_r = jnp.transpose(x, (0, 2, 1)).reshape(B, C, H, W)
    z = jnp.einsum('bchw,oc->bohw', x_r, conv_w) + conv_b[None, :, None, None]
    inv = bn_gamma / jnp.sqrt(bn_var + bn_eps)
    z = (z - bn_mean[None, :, None, None]) * inv[None, :, None, None] \
        + bn_beta[None, :, None, None]
    z = jnp.maximum(z, 0.0)
    s = up_stride
    return jnp.repeat(jnp.repeat(z, s, axis=2), s, axis=3)   # nearest upsample


if __name__ == "__main__":
    key = jax.random.PRNGKey(0)
    kx, kw, kb, kg, kbe, km, kv = jax.random.split(key, 7)

    B, inplanes, outplanes = 2, 16, 8
    H = W = 16
    up_stride = 2

    x = jax.random.normal(kx, (B, H * W, inplanes), dtype=jnp.float32)
    bound = 1.0 / (inplanes ** 0.5)
    conv_w = jax.random.uniform(kw, (outplanes, inplanes), jnp.float32, -bound, bound)
    conv_b = jax.random.uniform(kb, (outplanes,), jnp.float32, -bound, bound)
    bn_gamma = jax.random.uniform(kg, (outplanes,), jnp.float32, 0.5, 1.5)
    bn_beta = jax.random.uniform(kbe, (outplanes,), jnp.float32, -0.5, 0.5)
    bn_mean = jax.random.uniform(km, (outplanes,), jnp.float32, -0.5, 0.5)
    bn_var = jax.random.uniform(kv, (outplanes,), jnp.float32, 0.5, 1.5)

    # f32 path (tight tolerance).
    out = fcu_up_pallas(x, conv_w, conv_b, bn_gamma, bn_beta, bn_mean, bn_var,
                        H, W, up_stride)
    out = jax.block_until_ready(out)
    ref = fcu_up_ref(x, conv_w, conv_b, bn_gamma, bn_beta, bn_mean, bn_var,
                     H, W, up_stride)
    assert out.shape == (B, outplanes, H * up_stride, W * up_stride)
    assert jnp.allclose(out, ref, atol=1e-4, rtol=1e-4), "f32 mismatch vs reference"

    # bf16 path (MXU in bf16, loose tolerance).
    x_bf16 = x.astype(jnp.bfloat16)
    out_bf = fcu_up_pallas(x_bf16, conv_w, conv_b, bn_gamma, bn_beta, bn_mean, bn_var,
                           H, W, up_stride)
    out_bf = jax.block_until_ready(out_bf)
    ref_bf = fcu_up_ref(x_bf16.astype(jnp.float32), conv_w, conv_b,
                        bn_gamma, bn_beta, bn_mean, bn_var, H, W, up_stride)
    assert out_bf.shape == (B, outplanes, H * up_stride, W * up_stride)
    assert jnp.allclose(out_bf.astype(jnp.float32), ref_bf, atol=3e-2, rtol=3e-2), \
        "bf16 mismatch vs reference"

    print("KERNEL_OK")
</pallas_src>

<mosaic_0001>
module attributes {stable_mosaic.version = 11 : i64} {
  func.func @kernel(%arg0: i32, %arg1: i32, %arg2: i32, %arg3: memref<1x256x16xf32, #tpu.memory_space<vmem>>, %arg4: memref<8x16xf32, #tpu.memory_space<vmem>>, %arg5: memref<8x1xf32, #tpu.memory_space<vmem>>, %arg6: memref<16x64xf32, #tpu.memory_space<vmem>>, %arg7: memref<1x8x16x64xf32, #tpu.memory_space<vmem>>, %arg8: memref<8x16x64xf32, #tpu.memory_space<vmem>>) attributes {dimension_semantics = [#tpu.dimension_semantics<parallel>, #tpu.dimension_semantics<parallel>, #tpu.dimension_semantics<parallel>], iteration_bounds = array<i64: 2, 1, 1>, scalar_prefetch = 0 : i64, scratch_operands = 1 : i64, tpu.core_type = #tpu.core_type<tc>, window_params = [{transform_indices = @transform_0, window_bounds = array<i64: 1, 256, 16>}, {transform_indices = @transform_1, window_bounds = array<i64: 8, 16>}, {transform_indices = @transform_2, window_bounds = array<i64: 8, 1>}, {pipeline_mode = #tpu.pipeline_mode<synchronous>, transform_indices = @transform_3, window_bounds = array<i64: 16, 64>}, {transform_indices = @transform_4, window_bounds = array<i64: 1, 8, 16, 64>}]} {
    %c0 = arith.constant 0 : index
    %c0_0 = arith.constant 0 : index
    %0 = vector.load %arg4[%c0, %c0_0] : memref<8x16xf32, #tpu.memory_space<vmem>>, vector<8x16xf32>
    %c0_1 = arith.constant 0 : index
    %c0_2 = arith.constant 0 : index
    %1 = vector.load %arg5[%c0_1, %c0_2] : memref<8x1xf32, #tpu.memory_space<vmem>>, vector<8x1xf32>
    %c0_3 = arith.constant 0 : index
    %c0_4 = arith.constant 0 : index
    %2 = vector.load %arg6[%c0_3, %c0_4] : memref<16x64xf32, #tpu.memory_space<vmem>>, vector<16x64xf32>
    %c0_i32 = arith.constant 0 : i32
    %c16_i32 = arith.constant 16 : i32
    %3 = arith.addi %c0_i32, %c16_i32 : i32
    %c1_i32 = arith.constant 1 : i32
    scf.for %arg9 = %c0_i32 to %3 step %c1_i32  : i32 {
      %c1_i32_13 = arith.constant 1 : i32
      %8 = arith.muli %arg9, %c1_i32_13 : i32
      %c0_i32_14 = arith.constant 0 : i32
      %9 = arith.addi %c0_i32_14, %8 : i32
      %c16_i32_15 = arith.constant 16 : i32
      %10 = arith.muli %9, %c16_i32_15 : i32
      %11 = tpu.assume_multiple %10, 16 : i32
      %c0_16 = arith.constant 0 : index
      %12 = arith.index_cast %11 : i32 to index
      %c0_17 = arith.constant 0 : index
      %13 = vector.load %arg3[%c0_16, %12, %c0_17] : memref<1x256x16xf32, #tpu.memory_space<vmem>>, vector<1x16x16xf32>
      %14 = vector.shape_cast %13 : vector<1x16x16xf32> to vector<16x16xf32>
      %cst = arith.constant dense<0.000000e+00> : vector<8x16xf32>
      %15 = tpu.matmul %0, %14, %cst {dimension_numbers = #tpu.dot_dimension_numbers<[1], [1], [0], [0], [0, 0, 1, 0], [], []>} : vector<8x16xf32>, vector<16x16xf32>, vector<8x16xf32> -> vector<8x16xf32>
      %16 = vector.broadcast %1 : vector<8x1xf32> to vector<8x16xf32>
      %17 = arith.addf %15, %16 : vector<8x16xf32>
      %cst_18 = arith.constant 0.000000e+00 : f32
      %18 = vector.broadcast %cst_18 : f32 to vector<8x16xf32>
      %19 = arith.maximumf %17, %18 : vector<8x16xf32>
      %cst_19 = arith.constant dense<0.000000e+00> : vector<8x64xf32>
      %20 = tpu.matmul %19, %2, %cst_19 {dimension_numbers = #tpu.dot_dimension_numbers<[1], [0], [0], [1], [0, 0, 1, 1], [], []>} : vector<8x16xf32>, vector<16x64xf32>, vector<8x64xf32> -> vector<8x64xf32>
      %c0_20 = arith.constant 0 : index
      %21 = arith.index_cast %9 : i32 to index
      %c0_21 = arith.constant 0 : index
      %22 = vector.load %arg8[%c0_20, %21, %c0_21] : memref<8x16x64xf32, #tpu.memory_space<vmem>>, vector<8x1x64xf32>
      %23 = vector.shape_cast %22 : vector<8x1x64xf32> to vector<8x64xf32>
      %24 = vector.shape_cast %20 : vector<8x64xf32> to vector<8x1x64xf32>
      tpu.vector_store %arg8[%c0_20, %21, %c0_21], %24 {strides = array<i32>} : memref<8x16x64xf32, #tpu.memory_space<vmem>>, vector<8x1x64xf32>,
    }
    %c16_i32_5 = arith.constant 16 : i32
    %c0_6 = arith.constant 0 : index
    %c0_7 = arith.constant 0 : index
    %c0_8 = arith.constant 0 : index
    %4 = vector.load %arg8[%c0_6, %c0_7, %c0_8] : memref<8x16x64xf32, #tpu.memory_space<vmem>>, vector<8x16x64xf32>
    %c0_9 = arith.constant 0 : index
    %c0_10 = arith.constant 0 : index
    %c0_11 = arith.constant 0 : index
    %c0_12 = arith.constant 0 : index
    %5 = vector.load %arg7[%c0_9, %c0_10, %c0_11, %c0_12] : memref<1x8x16x64xf32, #tpu.memory_space<vmem>>, vector<1x8x16x64xf32>
    %6 = vector.shape_cast %5 : vector<1x8x16x64xf32> to vector<8x16x64xf32>
    %7 = vector.shape_cast %4 : vector<8x16x64xf32> to vector<1x8x16x64xf32>
    tpu.vector_store %arg7[%c0_9, %c0_10, %c0_11, %c0_12], %7 {strides = array<i32>} : memref<1x8x16x64xf32, #tpu.memory_space<vmem>>, vector<1x8x16x64xf32>,
    return
  }
  func.func @transform_0(%arg0: i32, %arg1: i32, %arg2: i32) -> (i32, i32, i32) {
    %c0_i32 = arith.constant 0 : i32
    %c0_i32_0 = arith.constant 0 : i32
    return %arg0, %arg2, %c0_i32 : i32, i32, i32
  }
  func.func @transform_1(%arg0: i32, %arg1: i32, %arg2: i32) -> (i32, i32) {
    %c0_i32 = arith.constant 0 : i32
    %c0_i32_0 = arith.constant 0 : i32
    return %arg1, %c0_i32 : i32, i32
  }
  func.func @transform_2(%arg0: i32, %arg1: i32, %arg2: i32) -> (i32, i32) {
    %c0_i32 = arith.constant 0 : i32
    %c0_i32_0 = arith.constant 0 : i32
    return %arg1, %c0_i32 : i32, i32
  }
  func.func @transform_3(%arg0: i32, %arg1: i32, %arg2: i32) -> (i32, i32) {
    %c0_i32 = arith.constant 0 : i32
    %c0_i32_0 = arith.constant 0 : i32
    %c0_i32_1 = arith.constant 0 : i32
    return %c0_i32, %c0_i32_0 : i32, i32
  }
  func.func @transform_4(%arg0: i32, %arg1: i32, %arg2: i32) -> (i32, i32, i32, i32) {
    %c0_i32 = arith.constant 0 : i32
    %c0_i32_0 = arith.constant 0 : i32
    return %arg0, %arg1, %arg2, %c0_i32 : i32, i32, i32, i32
  }
}

</mosaic_0001>

<bundles_post_ra>
// kernel: tpu_custom_call.1
= control target key start
LH: loop header
LB: loop body
LE: loop exit
PB: predicated region body
PF: predicated region fallthrough
CT: control target
= control target key end

     0   :  { %9 = vsyncpa [#allocation4], 0  ;;  %s919_s0 = inlined_call_operand.vmem [shape: f32[2,256,16], index: 0, kind: input, shape index: {}]   ;;  %s920_s1 = inlined_call_operand.vmem [shape: f32[8,16], index: 1, kind: input, shape index: {}]   ;;  %s921_s2 = inlined_call_operand.vmem [shape: f32[8,1], index: 2, kind: input, shape index: {}]   ;;  %s922_s3 = inlined_call_operand.vmem [shape: f32[16,64], index: 3, kind: input, shape index: {}]   ;;  %s923_s4 = inlined_call_operand.hbm [shape: f32[2,8,16,64], index: 4, kind: output, shape index: {}]  }
   0x1   :  { %11 = vsyncpa [#allocation4 + $0x1], 0  ;;  %s750_s15 = smov 0   ;;  %s752_s16 = smov 0  }
   0x2   :  { %s754_s17 = smov 0   ;;  %s756_s18 = smov 0  }
   0x3   :  { %s758_s19 = smov 0   ;;  %s760_s20 = smov 0  }
   0x4 LB: > { %s545_s21 = sadd.s32 4294967295, %s716_s20   ;;  %s546_s22 = sadd.s32 4294967294, %s716_s20   ;;  %s716_s20 = sphi %s760_s20, %s17_s20   ;;  %s712_s19 = sphi %s758_s19, %s930_s19   ;;  %s708_s18 = sphi %s756_s18, %s929_s18   ;;  %s704_s17 = sphi %s754_s17, %s928_s17   ;;  %s700_s16 = sphi %s752_s16, %s927_s16   ;;  %s696_s15 = sphi %s750_s15, %s926_s15  }
   0x5   : > { %s36_s23 = sadd.s32 1, %s712_s19  ;;  %s148_s24 = sadd.s32 1, %s704_s17 }
   0x6   : > { %p38_p0 = scmp.ge.s32.totalorder %s36_s23, 2  ;;  %p158_p1 = scmp.ne.s32.totalorder %s704_s17, %s700_s16 }
   0x7   : > { %p159_p2 = scmp.eq.s32.totalorder %s545_s21, 1  ;;  %p164_p3 = scmp.ne.s32.totalorder %s700_s16, %s696_s15 }
   0x8   : > { %s932_s23 = smov (%p38_p0, %s36_s23), 0  ;;  %p165_p5 = scmp.eq.s32.totalorder %s546_s22, 1 }
   0x9   : > { %p790_p4 = por %p159_p2, %p158_p1  ;;  %s141_s26 = ssub.s32 %s712_s19, %s932_s23 }
   0xa   : > { %p551_p6 = scmp.ge.s32.totalorder %s716_s20, 1  ;;  %p146_p7 = scmp.eq.s32.totalorder %s141_s26, 0 }
   0xb   : > { %p797_p8 = por %p165_p5, %p164_p3  ;;  %p213_p9 = scmp.lt.s32.totalorder %s716_s20, 3 }
   0xc   : > { %s803_s28 = scalar_select %p146_p7, %s704_s17, %s148_s24  }
   0xd   : > { %p214_p10 = pnand %p551_p6, %p213_p9 }
   0xe   : > { %s248_s29 = sand.u32 (!%p214_p10), 1, %s700_s16   ;;  %p252_p11 = scmp.lt.s32.totalorder (!%p214_p10), %s708_s18, 1 }
   0xf   : > { %217 = sbr.rel (%p214_p10) target bundleno = 325 (0x145), region = 36  ;;  %s552_s10 = sshll.u32 (!%p214_p10), %s248_s29, 7 }
  0x10   : > { %s827_s26 = scalar_lea.vmem (!%p214_p10), [#allocation3], %s552_s10  ;;  %s829_s30 = smov (!%p214_p10), 0  }
  0x14   : > { %v271_v0 = vld [vmem:[%s920_s1] sm:$0xff]  ;;  %v274_v3 = vld [vmem:[%s922_s3 + $0x8] sm:$0xff]  ;;  %s253_s13 = scalar_select %p252_p11, %s708_s18, 1 }
  0x15   : > { %v272_v1 = vld [vmem:[%s921_s2] sm:$0xff] }
  0x16   : > { %v273_v2 = vld [vmem:[%s922_s3] sm:$0xff]  ;;  %s565_s14 = sshll.u32 %s253_s13, 8 }
  0x17   : > { %s825_s24 = scalar_lea.vmem %s919_s0, %s565_s14 }
  0x18 LB: >> { %338 = vmatpush.msra.mxu1 %v274_v3  ;;  %v722_v4 = vmov 0   ;;  %s555_s5 = sshll.u32 %s720_s30, 4  ;;  %vm290_vm0 = vcmask 130048   ;;  %vm360_vm1 = vcmask 516096   ;;  %s359_s7 = scalar_lea.vmem [#allocation2], %s720_s30  ;;  %s720_s30 = sphi %s829_s30, %s280_s30  }
  0x19   : >> { %633 = vset.pattern.permute.xlu0 %v722_v4  ;;  %s282_s6 = scalar_lea.vmem %s825_s24, %s555_s5  ;;  %s280_s30 = sadd.s32 1, %s720_s30  }
  0x1a   : >> { %287 = vperm.xlu0 %633, %v272_v1   ;;  %339 = vmatpush.msra.mxu1 %v273_v2  ;;  %v284_v5 = vld [vmem:[%s282_s6 + $0x8] sm:$0xff]  ;;  %v283_v6 = vld [vmem:[%s282_s6] sm:$0xff]  ;;  %p277_p12 = scmp.ge.s32.totalorder %s280_s30, 16  }
  0x1b   : >> { %556 = vmatpush.xpose.msk.msra.mxu0 %vm290_vm0, %v284_v5  ;;  %vm385_vm2 = vcmask (%p277_p12), 523264   ;;  %s566_s8 = sshll.u32 (%p277_p12), %s708_s18, 7  ;;  %s420_s18 = sshll.u32 (%p277_p12), %s827_s26, 4  ;;  %s421_s18 = int_to_ptr.vmem [resolvable:$true] %s420_s18 }
  0x1c   : > { %s419_s11 = scalar_lea.hbm (%p277_p12), %s923_s4, %s566_s8  ;;  %s403_s13 = scalar_lea.sflag (%p277_p12), [#allocation4], %s248_s29 }
  0x1d   : > { %s422_s12 = sshll.u32 (%p277_p12), %s419_s11, 4  ;;  %s654_s30 = scalar_lea.hbm (%p277_p12), %s923_s4, 256  ;;  %s423_s12 = int_to_ptr.hbm [resolvable:$true] %s422_s12 }
  0x1e   : > { %s648_s14 = sshra.s32 (%p277_p12), %s423_s12, 4  ;;  %s649_s14 = int_to_ptr.hbm [resolvable:$true] %s648_s14 }
  0x1f   : >> { %557 = vmatpush.xpose.msk.msra.mxu0 %vm290_vm0, %v283_v6  ;;  %s650_s21 = scalar_lea.hbm (%p277_p12), %s649_s14, 128  ;;  %p655_p2 = scmp.lt.s32.totalorder (%p277_p12), %s649_s14, %s923_s4 }
  0x20   : > { %p651_p13 = scmp.ne.s32.totalorder (%p277_p12), %s649_s14, %s650_s21  ;;  %p656_p3 = scmp.lt.s32.totalorder (%p277_p12), %s654_s30, %s650_s21 }
  0x22   : >> { %558 = vmatmul.msk.f32.vlgmr.msra.gmra.mxu0 %vm290_vm0, %v271_v0  ;;  %p652_p0 = pnand (%p277_p12), %p651_p13, %p790_p4  ;;  %p657_p5 = por (%p277_p12), %p656_p3, %p655_p2 }
  0x24   : > { %p653_p1 = pneg (%p277_p12), %p652_p0 }
  0x26   : > { %p658_p6 = pnand (%p277_p12), %p657_p5, %p653_p1 }
  0x8c   : >> { %v288_v7 = vpop.permute.xlu0 %287 }
  0x9f   : >> { %v317_v8 = vpop.f32.mrf.mxu0 }
  0xa0   : >> { %v318_v9 = vadd.f32 %v317_v8, %v288_v7 }
  0xa2   : >> { %v320_v10 = vmax.f32 %v318_v9, 0.0 }
  0xa4   : >> { %559 = vmatmul.msk.f32.vlgmr.msra.gmra.mxu1 %vm290_vm0, %v320_v10 }
 0x121   : >> { %v341_v11 = vpop.f32.mrf.mxu1 }
 0x122   : >> { %v345_v12 = vrot.slane %v341_v11, 1  ;;  %v346_v13 = vrot.slane %v341_v11, 2  ;;  %v347_v14 = vrot.slane %v341_v11, 3  ;;  %361 = vst.msk [vmem:[%s359_s7] sm:$0x1] %vm360_vm1, %v341_v11  ;;  %v348_v15 = vrot.slane %v341_v11, 4 }
 0x123   : >> { %v349_v16 = vrot.slane %v341_v11, 5  ;;  %v350_v17 = vrot.slane %v341_v11, 6  ;;  %v351_v18 = vrot.slane %v341_v11, 7 }
 0x124   : >> { %362 = vst.msk [vmem:[%s359_s7 + $0x10] sm:$0x1] %vm360_vm1, %v345_v12 }
 0x125   : >> { %363 = vst.msk [vmem:[%s359_s7 + $0x20] sm:$0x1] %vm360_vm1, %v346_v13 }
 0x126   : >> { %364 = vst.msk [vmem:[%s359_s7 + $0x30] sm:$0x1] %vm360_vm1, %v347_v14  ;;  %279 = sbr.rel (!%p277_p12) target bundleno = 24 (0x18), region = 86 }
 0x127   : >> { %365 = vst.msk [vmem:[%s359_s7 + $0x40] sm:$0x1] %vm360_vm1, %v348_v15 }
 0x128   : >> { %366 = vst.msk [vmem:[%s359_s7 + $0x50] sm:$0x1] %vm360_vm1, %v349_v16 }
 0x129   : >> { %367 = vst.msk [vmem:[%s359_s7 + $0x60] sm:$0x1] %vm360_vm1, %v350_v17 }
 0x12a   : >> { %368 = vst.msk [vmem:[%s359_s7 + $0x70] sm:$0x1] %vm360_vm1, %v351_v18 }
 0x131   : > { %v369_v19 = vld [vmem:[#allocation2] sm:$0xff]  ;;  %v370_v20 = vld [vmem:[#allocation2 + $0x8] sm:$0xff]  ;;  %v371_v21 = vld [vmem:[#allocation2 + $0x10] sm:$0xff] }
 0x132   : > { %386 = vst.msk [vmem:[%s827_s26] sm:$0xff] %vm385_vm2, %v369_v19  ;;  %v372_v22 = vld [vmem:[#allocation2 + $0x18] sm:$0xff]  ;;  %v373_v23 = vld [vmem:[#allocation2 + $0x20] sm:$0xff]  ;;  %v374_v24 = vld [vmem:[#allocation2 + $0x28] sm:$0xff] }
 0x133   : > { %387 = vst.msk [vmem:[%s827_s26 + $0x8] sm:$0xff] %vm385_vm2, %v370_v20  ;;  %v375_v25 = vld [vmem:[#allocation2 + $0x30] sm:$0xff]  ;;  %v376_v26 = vld [vmem:[#allocation2 + $0x38] sm:$0xff]  ;;  %v377_v27 = vld [vmem:[#allocation2 + $0x40] sm:$0xff] }
 0x134   : > { %388 = vst.msk [vmem:[%s827_s26 + $0x10] sm:$0xff] %vm385_vm2, %v371_v21  ;;  %v378_v28 = vld [vmem:[#allocation2 + $0x48] sm:$0xff]  ;;  %v379_v29 = vld [vmem:[#allocation2 + $0x50] sm:$0xff]  ;;  %v380_v30 = vld [vmem:[#allocation2 + $0x58] sm:$0xff] }
 0x135   : > { %389 = vst.msk [vmem:[%s827_s26 + $0x18] sm:$0xff] %vm385_vm2, %v372_v22  ;;  %v381_v31 = vld [vmem:[#allocation2 + $0x60] sm:$0xff]  ;;  %v382_v32 = vld [vmem:[#allocation2 + $0x68] sm:$0xff]  ;;  %v383_v33 = vld [vmem:[#allocation2 + $0x70] sm:$0xff] }
 0x136   : > { %390 = vst.msk [vmem:[%s827_s26 + $0x20] sm:$0xff] %vm385_vm2, %v373_v23  ;;  %v384_v34 = vld [vmem:[#allocation2 + $0x78] sm:$0xff] }
 0x137   : > { %391 = vst.msk [vmem:[%s827_s26 + $0x28] sm:$0xff] %vm385_vm2, %v374_v24 }
 0x138   : > { %392 = vst.msk [vmem:[%s827_s26 + $0x30] sm:$0xff] %vm385_vm2, %v375_v25 }
 0x139   : > { %393 = vst.msk [vmem:[%s827_s26 + $0x38] sm:$0xff] %vm385_vm2, %v376_v26 }
 0x13a   : > { %394 = vst.msk [vmem:[%s827_s26 + $0x40] sm:$0xff] %vm385_vm2, %v377_v27 }
 0x13b   : > { %395 = vst.msk [vmem:[%s827_s26 + $0x48] sm:$0xff] %vm385_vm2, %v378_v28 }
 0x13c   : > { %396 = vst.msk [vmem:[%s827_s26 + $0x50] sm:$0xff] %vm385_vm2, %v379_v29 }
 0x13d   : > { %397 = vst.msk [vmem:[%s827_s26 + $0x58] sm:$0xff] %vm385_vm2, %v380_v30 }
 0x13e   : > { %398 = vst.msk [vmem:[%s827_s26 + $0x60] sm:$0xff] %vm385_vm2, %v381_v31 }
 0x13f   : > { %399 = vst.msk [vmem:[%s827_s26 + $0x68] sm:$0xff] %vm385_vm2, %v382_v32 }
 0x140   : > { %400 = vst.msk [vmem:[%s827_s26 + $0x70] sm:$0xff] %vm385_vm2, %v383_v33 }
 0x141   : > { %401 = vst.msk [vmem:[%s827_s26 + $0x78] sm:$0xff] %vm385_vm2, %v384_v34 }
 0x142   : > { %661 = shalt.err (!%p658_p6)
}
 0x143   : > { %s723_s29 = smov 128   ;;  %s724_s26 = smov 8  }
 0x144   : > { %567 = dma.vmem_to_hbm [thread:$0]  (%p790_p4), %s421_s18, 2048, %s423_s12, %s403_s13, %s723_s29, %s723_s29, %s724_s26  }
 0x145 PF: > { %p573_p7 = scmp.ge.s32.totalorder %s716_s20, 2  ;;  %s437_s7 = sand.u32 1, %s696_s15  }
 0x146   : > { %s438_s8 = scalar_lea.sflag [#allocation4], %s437_s7 }
 0x147   : > { %p570_p9 = pnand %p573_p7, %p797_p8 }
 0x149   : > { %p571_p10 = pneg %p570_p9 }
 0x14b   : > { %691 = dma.done.wait (%p571_p10), %s438_s8, 2048  }
 0x14c   : > { %693 = vsyncadd (%p571_p10), %s438_s8, 4294965248  ;;  %s17_s20 = sadd.s32 1, %s716_s20   ;;  %s926_s15 = smov %s700_s16 }
 0x14d   : > { %p14_p11 = scmp.ge.s32.totalorder %s17_s20, 4   ;;  %s927_s16 = smov %s704_s17 }
 0x14e   : > { %s928_s17 = smov %s803_s28  ;;  %s929_s18 = smov %s712_s19 }
 0x14f   : > { %s930_s19 = smov %s932_s23  ;;  %16 = sbr.rel (!%p14_p11) target bundleno = 4 (0x4), region = 97 }
 0x154   :  { %444 = vsyncpa [#allocation4], 1 }
 0x155   :  { %446 = vsyncpa [#allocation4 + $0x1], 1 }

</bundles_post_ra>
